<compile_context>
chip_gen: v7x
topology: tpu7x:2x2x1
jax: 0.10.0
libtpu: 0.0.40
codegen_flags: <defaults>
</compile_context>

<pallas_src>
import jax
import jax.numpy as jnp
from jax import lax
from jax.experimental import pallas as pl
from jax.experimental.pallas import tpu as pltpu


def _ceil_to(x, m):
    return -(-x // m) * m


def _arx_kernel(x_ref, h0_ref, o0_ref, mb_ref, mh_ref, k_ref, bias_ref, y_ref,
                halo_ref, state_ref):
    """One (batch block, time chunk) grid step.

    x_ref     : (b_chunk, t_chunk*C)   chunk inputs, row-major (time, channel) on lanes
    h0_ref    : (b_chunk, D*C)         initial input history (from itdl)
    o0_ref    : (b_chunk, n_fb)        initial output history (from otdl)
    mb_ref    : (t_chunk*C, t_chunk)   (L @ Tb)^T   combined FIR+IIR response (in-chunk)
    mh_ref    : (D*C, t_chunk)         (L @ Th)^T   combined FIR+IIR response (halo)
    k_ref     : (n_fb, t_chunk)        initial-feedback-state response
    bias_ref  : (1, t_chunk)           bias propagated through the IIR
    y_ref     : (b_chunk, t_chunk)     predictions for this chunk (batch x time)
    halo_ref  : (b_chunk, D*C)         scratch: carried input halo
    state_ref : (b_chunk, n_fb)        scratch: carried output-feedback state
    """
    it = pl.program_id(1)

    # First time chunk of each batch block: seed the carried state from the TDLs.
    @pl.when(it == 0)
    def _seed():
        halo_ref[...] = h0_ref[...]
        state_ref[...] = o0_ref[...]

    f32 = jnp.float32
    x = x_ref[...]
    y = jnp.dot(x, mb_ref[...], preferred_element_type=f32)
    y = y + jnp.dot(halo_ref[...], mh_ref[...], preferred_element_type=f32)
    y = y + jnp.dot(state_ref[...], k_ref[...], preferred_element_type=f32)
    y = y + bias_ref[...]                      # (1, t_chunk) broadcast over batch rows
    y_ref[...] = y

    # Carry the last D*C input samples and the last n_fb predictions to the next chunk.
    halo_w = halo_ref.shape[1]
    n_fb = state_ref.shape[1]
    halo_ref[...] = x_ref[:, x_ref.shape[1] - halo_w:]
    state_ref[...] = y[:, y.shape[1] - n_fb:]


def make_arx_params(key, input_delay_size, output_delay_size, input_size,
                    output_size, zero_input_delay=False, dtype=jnp.float32):
    """Deterministic parameter init matching ARXCell.__init__ shapes (f32 on TPU)."""
    k1, k2, k3 = jax.random.split(key, 3)
    d_iw = input_delay_size * input_size + int(zero_input_delay) * input_size
    d_ow = output_delay_size * output_size
    return dict(
        iw=0.01 * jax.random.normal(k1, (1, d_iw), dtype),
        ow=0.01 * jax.random.normal(k2, (1, d_ow), dtype),
        b=0.01 * jax.random.normal(k3, (1, 1), dtype),
    )


def arx_forward(params, inputs, itdl, otdl, *, input_size, output_size,
                input_delay_size, output_delay_size, zero_input_delay=False,
                time_chunk=512, batch_chunk=512):
    """ARX.forward: multi-step-ahead prediction (prediction fed back into otdl)."""
    # The ARX prediction is a scalar per step (iw/ow have a single row); the PyTorch
    # a2.view(-1, 1, output_size) is only shape-consistent for output_size == 1.
    assert output_size == 1
    assert input_delay_size >= 1 and output_delay_size >= 1

    B, H, n_ch = inputs.shape
    assert n_ch == input_size
    n_dly = input_delay_size
    n_fb = output_delay_size * output_size
    n_win = n_dly + (1 if zero_input_delay else 0)
    halo_w = n_dly * n_ch

    f32 = jnp.float32
    iw = params["iw"].astype(f32)                       # (1, n_win * n_ch)
    ow = params["ow"].astype(f32)                       # (1, n_fb)
    b0 = params["b"].astype(f32)[0, 0]

    # --- tiling (explicit VMEM budget; limits safe on v5e/v6e/v7x) -------------
    budget = 36 * 1024 * 1024
    time_chunk = max(128, _ceil_to(time_chunk, 128))    # MXU/lane aligned
    t_chunk = min(time_chunk, _ceil_to(H, 128))
    while 2 * t_chunk * t_chunk * n_ch * 4 > budget // 2 and t_chunk > 128:
        t_chunk -= 128                                  # keep the dense Mb operand small
    h_pad = _ceil_to(H, t_chunk)
    n_tb = h_pad // t_chunk
    assert n_dly <= t_chunk and n_fb <= t_chunk

    batch_chunk = max(8, _ceil_to(batch_chunk, 8))
    if B > batch_chunk:
        b_chunk = batch_chunk
    elif B >= 256:
        # Guarantee >= 2 batch blocks so the "parallel" axis feeds both v7x cores.
        b_chunk = _ceil_to(pl.cdiv(B, 2), 8)
    else:
        b_chunk = _ceil_to(B, 8)

    def _vmem_bytes(bc, tc):
        return 4 * (2 * bc * tc * n_ch          # x block (double-buffered)
                    + 2 * bc * tc               # y block
                    + 2 * tc * tc * n_ch        # Mb
                    + 2 * (halo_w + n_fb + 1) * tc   # Mh + K + bias
                    + 3 * bc * (halo_w + n_fb))      # h0/o0 blocks + scratch carries

    while _vmem_bytes(b_chunk, t_chunk) > budget and b_chunk > 8:
        b_chunk = max(8, _ceil_to(b_chunk // 2, 8))
    b_pad = _ceil_to(B, b_chunk)
    n_bb = b_pad // b_chunk

    # --- kernel operands: batch on sublanes, time (x channel) on lanes ---------
    x = inputs.astype(f32)
    x = jnp.pad(x, ((0, b_pad - B), (0, h_pad - H), (0, 0)))
    xflat = x.reshape(b_pad, h_pad * n_ch)              # natural row-major flatten

    h0 = jnp.pad(itdl[..., 0].astype(f32), ((0, b_pad - B), (0, 0)))   # (b_pad, D*C)
    o0 = jnp.pad(otdl[..., 0].astype(f32), ((0, b_pad - B), (0, 0)))   # (b_pad, n_fb)

    # --- precompute impulse-response / Toeplitz matmul operands ----------------
    # V[t] gives y[t] as a linear functional of [drive(0..T-1) ; initial state(0..n_fb-1)].
    ow_vec = ow[0]
    W = t_chunk + n_fb
    eye_rows = jnp.eye(t_chunk, W, dtype=f32)
    carry0 = jnp.concatenate(
        [jnp.zeros((n_fb, t_chunk), f32), jnp.eye(n_fb, dtype=f32)], axis=1)

    def _step(carry, e_t):                              # carry rows = v[t-n_fb .. t-1]
        v_t = ow_vec @ carry + e_t
        carry = jnp.concatenate([carry[1:], v_t[None, :]], axis=0)
        return carry, v_t

    _, V = lax.scan(_step, carry0, eye_rows)
    L = V[:, :t_chunk]                                  # (T, T) lower-tri IIR response
    Kmat = V[:, t_chunk:]                               # (T, n_fb) initial-state response

    # Banded FIR Toeplitz matrices from iw (in-chunk body + previous-chunk halo).
    iw_kc = iw[0].reshape(n_win, n_ch)
    t_idx = jnp.arange(t_chunk)
    kb = t_idx[None, :] - t_idx[:, None] + n_dly        # tap index for in-chunk samples
    Tb = jnp.where(((kb >= 0) & (kb < n_win))[..., None],
                   iw_kc[jnp.clip(kb, 0, n_win - 1)], 0.0)
    Tb = Tb.reshape(t_chunk, t_chunk * n_ch)
    kh = jnp.arange(n_dly)[None, :] - t_idx[:, None]    # tap index for halo samples
    Th = jnp.where(((kh >= 0) & (kh < n_win))[..., None],
                   iw_kc[jnp.clip(kh, 0, n_win - 1)], 0.0)
    Th = Th.reshape(t_chunk, halo_w)

    Mb = (L @ Tb).T                                     # (T*C, T)
    Mh = (L @ Th).T                                     # (D*C, T)
    Kt = Kmat.T                                         # (n_fb, T)
    bias_row = (b0 * jnp.sum(L, axis=1))[None, :]       # (1, T)

    y_pad = pl.pallas_call(
        _arx_kernel,
        out_shape=jax.ShapeDtypeStruct((b_pad, h_pad), f32),
        grid=(n_bb, n_tb),
        in_specs=[
            pl.BlockSpec((b_chunk, t_chunk * n_ch), lambda ib, it: (ib, it)),
            pl.BlockSpec((b_chunk, halo_w), lambda ib, it: (ib, 0)),
            pl.BlockSpec((b_chunk, n_fb), lambda ib, it: (ib, 0)),
            pl.BlockSpec((t_chunk * n_ch, t_chunk), lambda ib, it: (0, 0)),
            pl.BlockSpec((halo_w, t_chunk), lambda ib, it: (0, 0)),
            pl.BlockSpec((n_fb, t_chunk), lambda ib, it: (0, 0)),
            pl.BlockSpec((1, t_chunk), lambda ib, it: (0, 0)),
        ],
        out_specs=pl.BlockSpec((b_chunk, t_chunk), lambda ib, it: (ib, it)),
        scratch_shapes=[
            pltpu.VMEM((b_chunk, halo_w), f32),          # carried input halo
            pltpu.VMEM((b_chunk, n_fb), f32),            # carried feedback state
        ],
        compiler_params=pltpu.CompilerParams(
            dimension_semantics=("parallel", "arbitrary"),
            vmem_limit_bytes=48 * 1024 * 1024,
        ),
    )(xflat, h0, o0, Mb, Mh, Kt, bias_row)

    y_bt = y_pad[:B, :H]                                # (B, H) — already batch-major
    # PyTorch writes the scalar prediction into every input column of the output.
    outputs = jnp.broadcast_to(y_bt[:, :, None], (B, H, n_ch)).astype(inputs.dtype)

    # Final TDL states derived in the wrapper (tiny; no kernel work needed).
    # TODO(synk): insert_tdl is not provided in the source file; assumed
    # shift-left-by-`shift`-and-append semantics (newest sample at the end).
    in_hist = jnp.concatenate(
        [itdl[..., 0].reshape(B, n_dly, n_ch).astype(inputs.dtype), inputs], axis=1)
    itdl_new = in_hist[:, -n_dly:, :].reshape(B, n_dly * n_ch, 1).astype(itdl.dtype)
    out_hist = jnp.concatenate([otdl[..., 0], y_bt.astype(otdl.dtype)], axis=1)
    otdl_new = out_hist[:, -n_fb:, None]
    return outputs, itdl_new, otdl_new


def arx_forward_ref(params, inputs, itdl, otdl, *, input_size, output_size,
                    input_delay_size, output_delay_size, zero_input_delay=False):
    """Pure-JAX sequential reference mirroring the PyTorch loop (for validation)."""
    d_in = input_delay_size * input_size
    iw, ow, b = params["iw"], params["ow"], params["b"]

    def step(carry, u):                                 # u: (B, input_size)
        it2, ot2 = carry
        y = it2 @ iw[0, :d_in] + ot2 @ ow[0] + b[0, 0]  # (B,)
        if zero_input_delay:
            y = y + u @ iw[0, d_in:]
        it2 = jnp.concatenate([it2[:, input_size:], u], axis=1)
        ot2 = jnp.concatenate([ot2[:, output_size:], y[:, None]], axis=1)
        return (it2, ot2), y

    (itf, otf), ys = lax.scan(step, (itdl[..., 0], otdl[..., 0]),
                              jnp.transpose(inputs, (1, 0, 2)))
    y_bt = jnp.transpose(ys, (1, 0))                    # (B, H)
    out = jnp.broadcast_to(y_bt[:, :, None], inputs.shape).astype(inputs.dtype)
    return out, itf[..., None], otf[..., None]


if __name__ == "__main__":
    def run_case(name, *, input_delay_size, output_delay_size, input_size,
                 output_size, zero_input_delay, B, H, time_chunk=512,
                 batch_chunk=512, seed=0):
        d_in = input_delay_size * input_size
        d_out = output_delay_size * output_size
        key = jax.random.PRNGKey(seed)
        k_par, k_u, k_it, k_ot = jax.random.split(key, 4)
        params = make_arx_params(k_par, input_delay_size, output_delay_size,
                                 input_size, output_size, zero_input_delay)
        inputs = jax.random.normal(k_u, (B, H, input_size), jnp.float32)
        itdl = 0.1 * jax.random.normal(k_it, (B, d_in, 1), jnp.float32)
        otdl = 0.1 * jax.random.normal(k_ot, (B, d_out, 1), jnp.float32)
        kw = dict(input_size=input_size, output_size=output_size,
                  input_delay_size=input_delay_size,
                  output_delay_size=output_delay_size,
                  zero_input_delay=zero_input_delay)
        y, it_n, ot_n = arx_forward(params, inputs, itdl, otdl,
                                    time_chunk=time_chunk,
                                    batch_chunk=batch_chunk, **kw)
        jax.block_until_ready((y, it_n, ot_n))
        y_r, it_r, ot_r = arx_forward_ref(params, inputs, itdl, otdl, **kw)
        assert jnp.allclose(y, y_r, rtol=2e-4, atol=2e-5), name
        assert jnp.allclose(it_n, it_r, rtol=2e-4, atol=2e-5), name
        assert jnp.allclose(ot_n, ot_r, rtol=2e-4, atol=2e-5), name

    # Base configuration (small shapes, single chunk).
    run_case("base", input_delay_size=4, output_delay_size=3, input_size=2,
             output_size=1, zero_input_delay=False, B=2, H=8)
    # Exercises multi-time-chunk pipelining, halo / feedback-state carry and
    # zero_input_delay handling (2 time chunks of 128).
    run_case("chunked_zid", input_delay_size=3, output_delay_size=2, input_size=1,
             output_size=1, zero_input_delay=True, B=3, H=200, time_chunk=128)
    # Exercises the parallel batch-block axis (2 batch blocks) + batch padding.
    run_case("batch_blocked", input_delay_size=2, output_delay_size=1, input_size=2,
             output_size=1, zero_input_delay=False, B=270, H=16, time_chunk=128)

    print("KERNEL_OK")
</pallas_src>

<mosaic_0001>
module attributes {stable_mosaic.version = 11 : i64} {
  func.func @_arx_kernel(%arg0: i32, %arg1: i32, %arg2: memref<8x256xf32, #tpu.memory_space<vmem>>, %arg3: memref<8x8xf32, #tpu.memory_space<vmem>>, %arg4: memref<8x3xf32, #tpu.memory_space<vmem>>, %arg5: memref<256x128xf32, #tpu.memory_space<vmem>>, %arg6: memref<8x128xf32, #tpu.memory_space<vmem>>, %arg7: memref<3x128xf32, #tpu.memory_space<vmem>>, %arg8: memref<1x128xf32, #tpu.memory_space<vmem>>, %arg9: memref<8x128xf32, #tpu.memory_space<vmem>>, %arg10: memref<8x8xf32, #tpu.memory_space<vmem>>, %arg11: memref<8x3xf32, #tpu.memory_space<vmem>>) attributes {dimension_semantics = [#tpu.dimension_semantics<parallel>, #tpu.dimension_semantics<arbitrary>], iteration_bounds = array<i64: 1, 1>, scalar_prefetch = 0 : i64, scratch_operands = 2 : i64, tpu.core_type = #tpu.core_type<tc>, window_params = [{transform_indices = @transform_0, window_bounds = array<i64: 8, 256>}, {transform_indices = @transform_1, window_bounds = array<i64: 8, 8>}, {transform_indices = @transform_2, window_bounds = array<i64: 8, 3>}, {pipeline_mode = #tpu.pipeline_mode<synchronous>, transform_indices = @transform_3, window_bounds = array<i64: 256, 128>}, {pipeline_mode = #tpu.pipeline_mode<synchronous>, transform_indices = @transform_4, window_bounds = array<i64: 8, 128>}, {pipeline_mode = #tpu.pipeline_mode<synchronous>, transform_indices = @transform_5, window_bounds = array<i64: 3, 128>}, {pipeline_mode = #tpu.pipeline_mode<synchronous>, transform_indices = @transform_6, window_bounds = array<i64: 1, 128>}, {transform_indices = @transform_7, window_bounds = array<i64: 8, 128>}]} {
    %c0_i32 = arith.constant 0 : i32
    %0 = arith.cmpi eq, %arg1, %c0_i32 : i32
    %1 = arith.extui %0 : i1 to i32
    %c0_i32_0 = arith.constant 0 : i32
    %2 = arith.cmpi ne, %1, %c0_i32_0 : i32
    scf.if %2 {
      %c0_23 = arith.constant 0 : index
      %c0_24 = arith.constant 0 : index
      %22 = vector.load %arg3[%c0_23, %c0_24] : memref<8x8xf32, #tpu.memory_space<vmem>>, vector<8x8xf32>
      %c0_25 = arith.constant 0 : index
      %c0_26 = arith.constant 0 : index
      %23 = vector.load %arg10[%c0_25, %c0_26] : memref<8x8xf32, #tpu.memory_space<vmem>>, vector<8x8xf32>
      tpu.vector_store %arg10[%c0_25, %c0_26], %22 {strides = array<i32>} : memref<8x8xf32, #tpu.memory_space<vmem>>, vector<8x8xf32>,
      %c0_27 = arith.constant 0 : index
      %c0_28 = arith.constant 0 : index
      %24 = vector.load %arg4[%c0_27, %c0_28] : memref<8x3xf32, #tpu.memory_space<vmem>>, vector<8x3xf32>
      %c0_29 = arith.constant 0 : index
      %c0_30 = arith.constant 0 : index
      %25 = vector.load %arg11[%c0_29, %c0_30] : memref<8x3xf32, #tpu.memory_space<vmem>>, vector<8x3xf32>
      tpu.vector_store %arg11[%c0_29, %c0_30], %24 {strides = array<i32>} : memref<8x3xf32, #tpu.memory_space<vmem>>, vector<8x3xf32>,
    } else {
    }
    %c0 = arith.constant 0 : index
    %c0_1 = arith.constant 0 : index
    %3 = vector.load %arg2[%c0, %c0_1] : memref<8x256xf32, #tpu.memory_space<vmem>>, vector<8x256xf32>
    %c0_2 = arith.constant 0 : index
    %c0_3 = arith.constant 0 : index
    %4 = vector.load %arg5[%c0_2, %c0_3] : memref<256x128xf32, #tpu.memory_space<vmem>>, vector<256x128xf32>
    %cst = arith.constant dense<0.000000e+00> : vector<8x128xf32>
    %5 = tpu.matmul %3, %4, %cst {dimension_numbers = #tpu.dot_dimension_numbers<[1], [0], [0], [1], [0, 0, 1, 1], [], []>} : vector<8x256xf32>, vector<256x128xf32>, vector<8x128xf32> -> vector<8x128xf32>
    %c0_4 = arith.constant 0 : index
    %c0_5 = arith.constant 0 : index
    %6 = vector.load %arg10[%c0_4, %c0_5] : memref<8x8xf32, #tpu.memory_space<vmem>>, vector<8x8xf32>
    %c0_6 = arith.constant 0 : index
    %c0_7 = arith.constant 0 : index
    %7 = vector.load %arg6[%c0_6, %c0_7] : memref<8x128xf32, #tpu.memory_space<vmem>>, vector<8x128xf32>
    %cst_8 = arith.constant dense<0.000000e+00> : vector<8x128xf32>
    %8 = tpu.matmul %6, %7, %cst_8 {dimension_numbers = #tpu.dot_dimension_numbers<[1], [0], [0], [1], [0, 0, 1, 1], [], []>} : vector<8x8xf32>, vector<8x128xf32>, vector<8x128xf32> -> vector<8x128xf32>
    %9 = arith.addf %5, %8 : vector<8x128xf32>
    %c0_9 = arith.constant 0 : index
    %c0_10 = arith.constant 0 : index
    %10 = vector.load %arg11[%c0_9, %c0_10] : memref<8x3xf32, #tpu.memory_space<vmem>>, vector<8x3xf32>
    %c0_11 = arith.constant 0 : index
    %c0_12 = arith.constant 0 : index
    %11 = vector.load %arg7[%c0_11, %c0_12] : memref<3x128xf32, #tpu.memory_space<vmem>>, vector<3x128xf32>
    %cst_13 = arith.constant dense<0.000000e+00> : vector<8x128xf32>
    %12 = tpu.matmul %10, %11, %cst_13 {dimension_numbers = #tpu.dot_dimension_numbers<[1], [0], [0], [1], [0, 0, 1, 1], [], []>} : vector<8x3xf32>, vector<3x128xf32>, vector<8x128xf32> -> vector<8x128xf32>
    %13 = arith.addf %9, %12 : vector<8x128xf32>
    %c0_14 = arith.constant 0 : index
    %c0_15 = arith.constant 0 : index
    %14 = vector.load %arg8[%c0_14, %c0_15] : memref<1x128xf32, #tpu.memory_space<vmem>>, vector<1x128xf32>
    %15 = vector.broadcast %14 : vector<1x128xf32> to vector<8x128xf32>
    %16 = arith.addf %13, %15 : vector<8x128xf32>
    %c0_16 = arith.constant 0 : index
    %c0_17 = arith.constant 0 : index
    %17 = vector.load %arg9[%c0_16, %c0_17] : memref<8x128xf32, #tpu.memory_space<vmem>>, vector<8x128xf32>
    tpu.vector_store %arg9[%c0_16, %c0_17], %16 {strides = array<i32>} : memref<8x128xf32, #tpu.memory_space<vmem>>, vector<8x128xf32>,
    %c0_18 = arith.constant 0 : index
    %c248 = arith.constant 248 : index
    %18 = vector.load %arg2[%c0_18, %c248] : memref<8x256xf32, #tpu.memory_space<vmem>>, vector<8x8xf32>
    %c0_19 = arith.constant 0 : index
    %c0_20 = arith.constant 0 : index
    %19 = vector.load %arg10[%c0_19, %c0_20] : memref<8x8xf32, #tpu.memory_space<vmem>>, vector<8x8xf32>
    tpu.vector_store %arg10[%c0_19, %c0_20], %18 {strides = array<i32>} : memref<8x8xf32, #tpu.memory_space<vmem>>, vector<8x8xf32>,
    %20 = vector.extract_strided_slice %16 {offsets = [0, 125], sizes = [8, 3], strides = [1, 1]} : vector<8x128xf32> to vector<8x3xf32>
    %c0_21 = arith.constant 0 : index
    %c0_22 = arith.constant 0 : index
    %21 = vector.load %arg11[%c0_21, %c0_22] : memref<8x3xf32, #tpu.memory_space<vmem>>, vector<8x3xf32>
    tpu.vector_store %arg11[%c0_21, %c0_22], %20 {strides = array<i32>} : memref<8x3xf32, #tpu.memory_space<vmem>>, vector<8x3xf32>,
    return
  }
  func.func @transform_0(%arg0: i32, %arg1: i32) -> (i32, i32) {
    %c0_i32 = arith.constant 0 : i32
    return %arg0, %arg1 : i32, i32
  }
  func.func @transform_1(%arg0: i32, %arg1: i32) -> (i32, i32) {
    %c0_i32 = arith.constant 0 : i32
    %c0_i32_0 = arith.constant 0 : i32
    return %arg0, %c0_i32 : i32, i32
  }
  func.func @transform_2(%arg0: i32, %arg1: i32) -> (i32, i32) {
    %c0_i32 = arith.constant 0 : i32
    %c0_i32_0 = arith.constant 0 : i32
    return %arg0, %c0_i32 : i32, i32
  }
  func.func @transform_3(%arg0: i32, %arg1: i32) -> (i32, i32) {
    %c0_i32 = arith.constant 0 : i32
    %c0_i32_0 = arith.constant 0 : i32
    %c0_i32_1 = arith.constant 0 : i32
    return %c0_i32, %c0_i32_0 : i32, i32
  }
  func.func @transform_4(%arg0: i32, %arg1: i32) -> (i32, i32) {
    %c0_i32 = arith.constant 0 : i32
    %c0_i32_0 = arith.constant 0 : i32
    %c0_i32_1 = arith.constant 0 : i32
    return %c0_i32, %c0_i32_0 : i32, i32
  }
  func.func @transform_5(%arg0: i32, %arg1: i32) -> (i32, i32) {
    %c0_i32 = arith.constant 0 : i32
    %c0_i32_0 = arith.constant 0 : i32
    %c0_i32_1 = arith.constant 0 : i32
    return %c0_i32, %c0_i32_0 : i32, i32
  }
  func.func @transform_6(%arg0: i32, %arg1: i32) -> (i32, i32) {
    %c0_i32 = arith.constant 0 : i32
    %c0_i32_0 = arith.constant 0 : i32
    %c0_i32_1 = arith.constant 0 : i32
    return %c0_i32, %c0_i32_0 : i32, i32
  }
  func.func @transform_7(%arg0: i32, %arg1: i32) -> (i32, i32) {
    %c0_i32 = arith.constant 0 : i32
    return %arg0, %arg1 : i32, i32
  }
}

</mosaic_0001>

<bundles_post_ra>
// kernel: tpu_custom_call.1
= control target key start
LH: loop header
LB: loop body
LE: loop exit
PB: predicated region body
PF: predicated region fallthrough
CT: control target
= control target key end

     0   :  { %12 = vsyncpa [#allocation5], 0  ;;  %s645_s0 = inlined_call_operand.hbm [shape: f32[8,256], index: 0, kind: input, shape index: {}]   ;;  %s646_s1 = inlined_call_operand.vmem [shape: f32[8,8], index: 1, kind: input, shape index: {}]   ;;  %s647_s2 = inlined_call_operand.vmem [shape: f32[8,3], index: 2, kind: input, shape index: {}]   ;;  %s648_s3 = inlined_call_operand.hbm [shape: f32[256,128], index: 3, kind: input, shape index: {}]   ;;  %s649_s4 = inlined_call_operand.vmem [shape: f32[8,128], index: 4, kind: input, shape index: {}]   ;;  %s650_s5 = inlined_call_operand.vmem [shape: f32[3,128], index: 5, kind: input, shape index: {}]   ;;  %s651_s6 = inlined_call_operand.vmem [shape: f32[1,128], index: 6, kind: input, shape index: {}]   ;;  %s652_s7 = inlined_call_operand.hbm [shape: f32[8,128], index: 7, kind: output, shape index: {}]  }
   0x1   :  { %13 = vsyncpa [#allocation8], 0 }
   0x2   :  { %14 = vsyncpa [#allocation6], 0  ;;  %s525_s24 = smov [#allocation4]   ;;  %s526_s26 = smov [#allocation7]  }
   0x3   :  { %s21_s25 = sshll.u32 %s525_s24, 4  ;;  %s34_s27 = sshll.u32 %s526_s26, 4  ;;  %s22_s25 = int_to_ptr.vmem [resolvable:$true] %s21_s25  ;;  %s573_s27 = int_to_ptr.vmem [resolvable:$true] %s34_s27 }
   0x4   :  { %s453_s30 = scalar_lea.hbm %s645_s0, 256 }
   0x5   :  { %p454_p0 = scmp.ne.s32.totalorder %s645_s0, %s453_s30  ;;  %p457_p1 = scmp.lt.u32.totalorder %s453_s30, %s645_s0 }
   0x7   :  { %p459_p2 = pnand %p457_p1, %p454_p0 }
   0x9   :  { %462 = shalt.err (!%p459_p2)
}
   0xa   :  { %s463_s12 = scalar_lea.vmem %s22_s25, 256  ;;  %p468_p4 = scmp.lt.s32.totalorder %s22_s25, %s22_s25 }
   0xb   :  { %p464_p3 = scmp.ne.s32.totalorder %s22_s25, %s463_s12  ;;  %p469_p5 = scmp.lt.s32.totalorder %s463_s12, %s463_s12 }
   0xd   :  { %p470_p6 = por %p469_p5, %p468_p4 }
   0xf   :  { %p471_p7 = pnand %p470_p6, %p464_p3 }
  0x11   :  { %474 = shalt.err (!%p471_p7)
}
  0x12   :  { %24 = dma.hbm_to_vmem [thread:$0]  %s645_s0, 256, %s22_s25, [#allocation5]  }
  0x13   :  { %s475_s17 = scalar_lea.hbm %s648_s3, 4096 }
  0x14   :  { %p476_p8 = scmp.ne.s32.totalorder %s648_s3, %s475_s17  ;;  %p479_p9 = scmp.lt.u32.totalorder %s475_s17, %s648_s3 }
  0x16   :  { %p481_p10 = pnand %p479_p9, %p476_p8 }
  0x18   :  { %484 = shalt.err (!%p481_p10)
}
  0x19   :  { %s485_s22 = scalar_lea.vmem %s573_s27, 4096  ;;  %p490_p12 = scmp.lt.s32.totalorder %s573_s27, %s573_s27 }
  0x1a   :  { %p486_p11 = scmp.ne.s32.totalorder %s573_s27, %s485_s22  ;;  %p491_p13 = scmp.lt.s32.totalorder %s485_s22, %s485_s22 }
  0x1c   :  { %p492_p0 = por %p491_p13, %p490_p12 }
  0x1e   :  { %p493_p1 = pnand %p492_p0, %p486_p11 }
  0x20   :  { %496 = shalt.err (!%p493_p1)
}
  0x21   :  { %s527_s0 = smov 128   ;;  %s528_s23 = smov 8  }
  0x22   :  { %40 = dma.hbm_to_vmem [thread:$0]  %s648_s3, 4096, %s573_s27, [#allocation8], %s527_s0, %s527_s0, %s528_s23  }
  0x23   :  { %519 = dma.done.wait [#allocation5], 256  }
  0x24   :  { %520 = vsyncadd [#allocation5], 4294967040 }
  0x25   :  { %521 = dma.done.wait [#allocation8], 4096  }
  0x26   :  { %522 = vsyncadd [#allocation8], 4294963200  ;;  %v529_v0 = vmov 0.0   ;;  %vm530_vm0 = vmmov 0   ;;  %v81_v1 = vld [vmem:[#allocation7 + $0x80] sm:$0xff]  ;;  %v82_v2 = vld [vmem:[#allocation7 + $0x88] sm:$0xff] }
  0x27   :  { %403 = vmatprep.subr.mxu0 %v529_v0  ;;  %405 = vmatprep.mubr.msk.f32.mxu0 %vm530_vm0, %v529_v0  ;;  %v65_v3 = vld [vmem:[#allocation7] sm:$0xff]  ;;  %v413_v4 = vpack.c.bf16 %v82_v2, %v81_v1  ;;  %v66_v5 = vld [vmem:[#allocation7 + $0x8] sm:$0xff]  ;;  %v83_v6 = vld [vmem:[#allocation7 + $0x90] sm:$0xff]  ;;  %vm58_vm1 = vcmask 64512   ;;  %vm61_vm2 = vcmask 23552   ;;  %vm249_vm3 = vcmask 1042432  }
  0x28   :  { %v84_v7 = vld [vmem:[#allocation7 + $0x98] sm:$0xff]  ;;  %v415_v8 = vpack.c.bf16 %v66_v5, %v65_v3  ;;  %v67_v10 = vld [vmem:[#allocation7 + $0x10] sm:$0xff]  ;;  %v85_v12 = vld [vmem:[#allocation7 + $0xa0] sm:$0xff]  ;;  %s531_s8 = smov [#allocation9]   ;;  %s532_s10 = smov 3  }
  0x29   :  { %v417_v9 = vpack.c.bf16 %v84_v7, %v83_v6  ;;  %v68_v11 = vld [vmem:[#allocation7 + $0x18] sm:$0xff]  ;;  %414 = vmatprep.subr.bf16.mxu1 %v413_v4  ;;  %v86_v13 = vld [vmem:[#allocation7 + $0xa8] sm:$0xff]  ;;  %v69_v16 = vld [vmem:[#allocation7 + $0x20] sm:$0xff]  ;;  %s350_s9 = sshll.u32 %s531_s8, 4  ;;  %s351_s9 = int_to_ptr.vmem [resolvable:$true] %s350_s9 }
  0x2a   :  { %416 = vmatpush3.bf16.msra.mxu1 %v415_v8  ;;  %v419_v14 = vpack.c.bf16 %v68_v11, %v67_v10  ;;  %v421_v15 = vpack.c.bf16 %v86_v13, %v85_v12  ;;  %v70_v17 = vld [vmem:[#allocation7 + $0x28] sm:$0xff]  ;;  %v87_v18 = vld [vmem:[#allocation7 + $0xb0] sm:$0xff]  ;;  %v88_v19 = vld [vmem:[#allocation7 + $0xb8] sm:$0xff]  ;;  %s497_s11 = scalar_lea.vmem %s351_s9, 128  ;;  %p502_p3 = scmp.lt.s32.totalorder %s351_s9, %s351_s9 }
  0x2b   :  { %418 = vmatprep.subr.bf16.mxu1 %v417_v9  ;;  %v423_v20 = vpack.c.bf16 %v70_v17, %v69_v16  ;;  %v425_v21 = vpack.c.bf16 %v88_v19, %v87_v18  ;;  %v71_v22 = vld [vmem:[#allocation7 + $0x30] sm:$0xff]  ;;  %v72_v23 = vld [vmem:[#allocation7 + $0x38] sm:$0xff]  ;;  %v89_v24 = vld [vmem:[#allocation7 + $0xc0] sm:$0xff]  ;;  %p498_p2 = scmp.ne.s32.totalorder %s351_s9, %s497_s11  ;;  %p503_p4 = scmp.lt.s32.totalorder %s497_s11, %s497_s11 }
  0x2c   :  { %v90_v25 = vld [vmem:[#allocation7 + $0xc8] sm:$0xff]  ;;  %v98_v26 = vld [vmem:[%s649_s4] sm:$0xff]  ;;  %v64_v27 = vld [vmem:[#allocation4 + $0x8] sm:$0xff]  ;;  %v427_v29 = vpack.c.bf16 %v72_v23, %v71_v22 }
  0x2d   :  { %404 = vmatpush3.msra.mxu0 %v98_v26  ;;  %v57_v28 = vld [vmem:[%s646_s1] sm:$0xff]  ;;  %237 = vmatprep.mubr.f32.mxu1 %v64_v27  ;;  %v429_v31 = vpack.c.bf16 %v90_v25, %v89_v24  ;;  %v74_v33 = vld [vmem:[#allocation7 + $0x48] sm:$0xff]  ;;  %v91_v34 = vld [vmem:[#allocation7 + $0xd0] sm:$0xff]  ;;  %p504_p5 = por %p503_p4, %p502_p3 }
  0x2e   :  { %420 = vmatpush3.bf16.msra.mxu1 %v419_v14  ;;  %59 = vst.msk [vmem:[#allocation2] sm:$0xff] %vm58_vm1, %v57_v28  ;;  %v60_v30 = vld [vmem:[%s647_s2] sm:$0xff]  ;;  %408 = vmatprep.subr.mxu0 %v529_v0  ;;  %v92_v35 = vld [vmem:[#allocation7 + $0xd8] sm:$0xff]  ;;  %v75_v38 = vld [vmem:[#allocation7 + $0x50] sm:$0xff] }
  0x2f   :  { %422 = vmatprep.subr.bf16.mxu1 %v421_v15  ;;  %v73_v32 = vld [vmem:[#allocation7 + $0x40] sm:$0xff]  ;;  %62 = vst.msk [vmem:[#allocation3] sm:$0xff] %vm61_vm2, %v60_v30  ;;  %335 = vrot.lane.b32.xlu0 %v64_v27, %s528_s23  ;;  %v433_v37 = vpack.c.bf16 %v92_v35, %v91_v34  ;;  %v76_v39 = vld [vmem:[#allocation7 + $0x58] sm:$0xff]  ;;  %v94_v41 = vld [vmem:[#allocation7 + $0xe8] sm:$0xff]  ;;  %p505_p6 = pnand %p504_p5, %p498_p2 }
  0x30   :  { %v431_v36 = vpack.c.bf16 %v74_v33, %v73_v32  ;;  %v93_v40 = vld [vmem:[#allocation7 + $0xe0] sm:$0xff]  ;;  %v435_v44 = vpack.c.bf16 %v76_v39, %v75_v38  ;;  %v78_v47 = vld [vmem:[#allocation7 + $0x68] sm:$0xff]  ;;  %v95_v49 = vld [vmem:[#allocation7 + $0xf0] sm:$0xff] }
  0x31   :  { %v244_v42 = vld [vmem:[%s650_s5] sm:$0x7]  ;;  %v437_v45 = vpack.c.bf16 %v94_v41, %v93_v40  ;;  %v96_v50 = vld [vmem:[#allocation7 + $0xf8] sm:$0xff]  ;;  %v79_v53 = vld [vmem:[#allocation7 + $0x70] sm:$0xff] }
  0x32   :  { %424 = vmatpush3.bf16.msra.mxu1 %v423_v20  ;;  %v77_v46 = vld [vmem:[#allocation7 + $0x60] sm:$0xff]  ;;  %v441_v52 = vpack.c.bf16 %v96_v50, %v95_v49  ;;  %v80_v54 = vld [vmem:[#allocation7 + $0x78] sm:$0xff]  ;;  %v63_v56 = vld [vmem:[#allocation4] sm:$0xff] }
  0x33   :  { %426 = vmatprep.subr.bf16.mxu1 %v425_v21  ;;  %v439_v51 = vpack.c.bf16 %v78_v47, %v77_v46  ;;  %v443_v55 = vpack.c.bf16 %v80_v54, %v79_v53  ;;  %v363_v2 = vld [vmem:[%s651_s6] ss:$0 sm:$0xff] }
  0x35   :  { %v97_v43 = vld [vmem:[#allocation2] sm:$0xff] }
  0x36   :  { %428 = vmatpush3.bf16.msra.mxu1 %v427_v29  ;;  %406 = vmatmul.mubr.msk.f32.vlgmr.msra.gmra.mrb[0].mxu0 %vm58_vm1, %v97_v43  ;;  %v243_v48 = vld [vmem:[#allocation3] sm:$0xff] }
  0x37   :  { %430 = vmatprep.subr.bf16.mxu1 %v429_v31  ;;  %409 = vmatpush3.msk.msra.mxu0 %vm249_vm3, %v244_v42 }
  0x38   :  { %410 = vmatprep.mubr.msk.f32.mxu0 %vm530_vm0, %v529_v0 }
  0x3a   :  { %432 = vmatpush3.bf16.msra.mxu1 %v431_v36  ;;  %411 = vmatmul.mubr.msk.f32.vlgmr.msra.gmra.mrb[2].mxu0 %vm61_vm2, %v243_v48 }
  0x3b   :  { %434 = vmatprep.subr.bf16.mxu1 %v433_v37 }
  0x3e   :  { %436 = vmatpush3.bf16.msra.mxu1 %v435_v44 }
  0x3f   :  { %438 = vmatprep.subr.bf16.mxu1 %v437_v45 }
  0x42   :  { %440 = vmatpush3.bf16.msra.mxu1 %v439_v51 }
  0x43   :  { %442 = vmatprep.subr.bf16.mxu1 %v441_v52 }
  0x46   :  { %444 = vmatpush3.bf16.msra.mxu1 %v443_v55 }
  0x49   :  { %238 = vmatmul.mubr.f32.vlgmr.msra.gmra.mrb[0].mxu1 %v63_v56 }
  0xa1   :  { %v336_v57 = vpop.permute.xlu0 %335 }
  0xa2   :  { %338 = vst.msk [vmem:[#allocation2] sm:$0xff] %vm58_vm1, %v336_v57 }
 0x109   :  { %v169_v58 = vpop.f32.mrb[0].mxu0 }
 0x10a   :  { %v407_v59 = vpop.f32.mrb[1].mxu0 }
 0x10d   :  { %v319_v60 = vpop.f32.mrb[2].mxu0 }
 0x10e   :  { %v412_v61 = vpop.f32.mrb[3].mxu0 }
 0x11c   :  { %v398_v62 = vpop.f32.mrb[0].mxu1 }
 0x11d   :  { %v399_v63 = vpop.f32.mrb[1].mxu1 }
 0x11e   :  { %v400_v0 = vadd.f32 %v399_v63, %v398_v62 }
 0x120   :  { %v240_v1 = vadd.f32 %v400_v0, %v169_v58 }
 0x122   :  { %v323_v3 = vadd.f32 %v319_v60, %v240_v1 }
 0x124   :  { %v331_v4 = vadd.f32 %v363_v2, %v323_v3 }
 0x126   :  { %332 = vst [vmem:[#allocation9] sm:$0xff] %v331_v4  ;;  %340 = vrot.lane.b32.xlu0 %v331_v4, %s532_s10 }
 0x127   :  { %508 = shalt.err (!%p505_p6)
}
 0x128   :  { %s509_s14 = scalar_lea.hbm %s652_s7, 128 }
 0x129   :  { %p510_p7 = scmp.ne.s32.totalorder %s652_s7, %s509_s14  ;;  %p513_p8 = scmp.lt.u32.totalorder %s509_s14, %s652_s7 }
 0x12b   :  { %p515_p9 = pnand %p513_p8, %p510_p7 }
 0x12d   :  { %518 = shalt.err (!%p515_p9)
}
 0x12e   :  { %353 = dma.vmem_to_hbm [thread:$0]  %s351_s9, 128, %s652_s7, [#allocation6]  }
 0x198   :  { %v341_v5 = vpop.permute.xlu0 %340 }
 0x199   :  { %343 = vst.msk [vmem:[#allocation3] sm:$0xff] %vm61_vm2, %v341_v5 }
 0x19a   :  { %523 = dma.done.wait [#allocation6], 128  }
 0x19b   :  { %524 = vsyncadd [#allocation6], 4294967168 }
 0x19c   :  { %357 = vsyncpa [#allocation5], 1 }
 0x19d   :  { %358 = vsyncpa [#allocation8], 1 }
 0x19e   :  { %359 = vsyncpa [#allocation6], 1 }

</bundles_post_ra>
